<compile_context>
chip_gen: v6e
topology: v6e:2x2x1
jax: 0.10.0
libtpu: 0.0.40
codegen_flags: <defaults>
</compile_context>

<pallas_src>
import jax
import jax.numpy as jnp
from jax.experimental import pallas as pl
from jax.experimental.pallas import tpu as pltpu

_VMEM_LIMIT_BYTES = 48 * 1024 * 1024   # well under v7x's 64 MiB physical VMEM
_VMEM_BUDGET_BYTES = 40 * 1024 * 1024  # target used when picking the row tile
_MIN_SPLIT_ROWS = 256                  # only split a lone tile if halves >= this


def _round_up(x, m):
    return ((x + m - 1) // m) * m


def _supports_bf16_valu():
    """bf16 VALU exists on v6e / v7x; v5e and older unpack bf16 on the VPU."""
    try:
        kind = jax.devices()[0].device_kind.lower()
    except Exception:
        return True
    return not any(tag in kind for tag in ("v2", "v3", "v4", "v5"))


def _vmem_estimate(tm, latent_dim, h_dim, out_dim_p, c_size, e_size, o_size,
                   weight_bufs):
    """Rough per-kernel VMEM footprint (bytes) for a given row tile."""
    weights = (latent_dim * h_dim + h_dim * h_dim + h_dim * out_dim_p) * c_size
    biases = 2 * h_dim * e_size + out_dim_p * 4
    io = 2 * tm * latent_dim * c_size + 2 * tm * out_dim_p * o_size
    inter = 2 * tm * h_dim * (4 + c_size)   # f32 accumulators + cast copies
    return weight_bufs * (weights + biases) + io + inter


def _dhbarrier_kernel(x_ref, w1_ref, b1_ref, w2_ref, b2_ref, w3_ref, b3_ref,
                      out_ref):
    """One (tm, latent_dim) row tile through the 3-layer MLP.

    x / w*: compute dtype (bf16 or f32); b1 / b2: epilogue dtype; b3: f32.
    Matmuls accumulate in f32 on the MXU; final bias add + tanh stay f32.
    """
    w_dtype = w1_ref.dtype
    e_dtype = b1_ref.dtype

    h = jnp.dot(x_ref[...], w1_ref[...], preferred_element_type=jnp.float32)
    h = jnp.maximum(h.astype(e_dtype) + b1_ref[...], 0).astype(w_dtype)

    h = jnp.dot(h, w2_ref[...], preferred_element_type=jnp.float32)
    h = jnp.maximum(h.astype(e_dtype) + b2_ref[...], 0).astype(w_dtype)

    ab = jnp.dot(h, w3_ref[...], preferred_element_type=jnp.float32)
    ab = jnp.tanh(ab + b3_ref[...])
    out_ref[...] = ab.astype(out_ref.dtype)


def dhbarrier_mlp(x2d, params, *, tm=512, compute_dtype=jnp.bfloat16,
                  single_buffer_weights=None):
    """Run the cbf MLP on a (M, latent_dim) batch.

    Returns an (M, out_dim_p) slab whose first (n_control+1) columns hold the
    module output; the remaining columns are tanh(0)=0 padding.  The slab is
    bfloat16 on the bf16 path and float32 otherwise.
    """
    w1, b1, w2, b2, w3, b3 = params
    m, latent_dim = x2d.shape
    h_dim = w1.shape[1]
    out_dim = w3.shape[1]

    # Lane-dense output width (multiple of 128) -> full unmasked vst stores.
    out_dim_p = max(128, _round_up(out_dim, 128))
    if out_dim_p != out_dim:
        w3 = jnp.pad(w3, ((0, 0), (0, out_dim_p - out_dim)))
        b3 = jnp.pad(b3, ((0, 0), (0, out_dim_p - out_dim)))

    bf16_path = jnp.dtype(compute_dtype) == jnp.dtype(jnp.bfloat16)
    out_dtype = jnp.bfloat16 if bf16_path else jnp.float32
    epilogue_dtype = (jnp.bfloat16 if (bf16_path and _supports_bf16_valu())
                      else jnp.float32)

    x2d_c = x2d.astype(compute_dtype)
    w1c, w2c, w3c = (w.astype(compute_dtype) for w in (w1, w2, w3))
    b1e = b1.astype(epilogue_dtype)
    b2e = b2.astype(epilogue_dtype)
    b3f = b3.astype(jnp.float32)

    # Row tile: multiple of 16 on the bf16 path (two rows per sublane),
    # clamped to the (rounded-up) batch so tiny inputs don't over-pad.
    align = 16 if bf16_path else 8
    m_aligned = _round_up(m, align)
    tm_eff = _round_up(min(tm, m_aligned), align)

    # Shrink the tile until the estimated VMEM footprint fits the budget.
    c_size = jnp.dtype(compute_dtype).itemsize
    e_size = jnp.dtype(epilogue_dtype).itemsize
    o_size = jnp.dtype(out_dtype).itemsize
    while (tm_eff > align and
           _vmem_estimate(tm_eff, latent_dim, h_dim, out_dim_p, c_size, e_size,
                          o_size, weight_bufs=2) > _VMEM_BUDGET_BYTES):
        tm_eff = max(align, _round_up(tm_eff // 2, align))

    # If everything landed in a single big tile, split it in two so the second
    # v7x TensorCore (and the pipeline) gets work, as long as halves stay big.
    if pl.cdiv(m, tm_eff) == 1 and m_aligned >= 2 * _MIN_SPLIT_ROWS:
        tm_eff = _round_up(pl.cdiv(m_aligned, 2), align)

    grid = (pl.cdiv(m, tm_eff),)

    cost = pl.CostEstimate(
        flops=2 * m * (latent_dim * h_dim + h_dim * h_dim + h_dim * out_dim_p),
        transcendentals=m * out_dim_p,
        bytes_accessed=(m * latent_dim * c_size
                        + (latent_dim * h_dim + h_dim * h_dim
                           + h_dim * out_dim_p) * c_size
                        + 2 * h_dim * e_size + out_dim_p * 4
                        + m * out_dim_p * o_size),
    )

    def build(single_buffered):
        # Weights / biases never change across the grid -> single-buffer them
        # (saves VMEM, lets the row tile grow) when the jax build supports it.
        const_kwargs = ({"pipeline_mode": pl.Buffered(1)} if single_buffered
                        else {})
        const_idx = lambda i: (0, 0)
        in_specs = [
            pl.BlockSpec((tm_eff, latent_dim), lambda i: (i, 0)),
            pl.BlockSpec((latent_dim, h_dim), const_idx, **const_kwargs),
            pl.BlockSpec((1, h_dim), const_idx, **const_kwargs),
            pl.BlockSpec((h_dim, h_dim), const_idx, **const_kwargs),
            pl.BlockSpec((1, h_dim), const_idx, **const_kwargs),
            pl.BlockSpec((h_dim, out_dim_p), const_idx, **const_kwargs),
            pl.BlockSpec((1, out_dim_p), const_idx, **const_kwargs),
        ]
        return pl.pallas_call(
            _dhbarrier_kernel,
            out_shape=jax.ShapeDtypeStruct((m, out_dim_p), out_dtype),
            grid_spec=pltpu.PrefetchScalarGridSpec(
                num_scalar_prefetch=0,
                grid=grid,
                in_specs=in_specs,
                out_specs=pl.BlockSpec((tm_eff, out_dim_p), lambda i: (i, 0)),
            ),
            compiler_params=pltpu.CompilerParams(
                dimension_semantics=("parallel",),
                vmem_limit_bytes=_VMEM_LIMIT_BYTES),
            cost_estimate=cost,
        )

    args = (x2d_c, w1c, b1e, w2c, b2e, w3c, b3f)
    if single_buffer_weights is None:
        # Try the VMEM-saving single-buffered weight blocks first; fall back to
        # default double-buffering if rejected.  (Pass True/False explicitly
        # when calling under jit, where the try/except cannot see lowering.)
        try:
            return build(True)(*args)
        except Exception:
            return build(False)(*args)
    return build(single_buffer_weights)(*args)


def dhbarrier_forward(x, params, *, tm=512, compute_dtype=jnp.bfloat16):
    """Matches DHBarrier.forward: returns (a, b) with a=out[...,:-1], b=out[...,-1]."""
    n_out = params[5].shape[1]  # n_control + 1  (b3 has shape (1, n_control+1))
    if x.ndim == 2:
        ab = dhbarrier_mlp(x, params, tm=tm, compute_dtype=compute_dtype)
        return (ab[:, :n_out - 1].astype(jnp.float32),
                ab[:, n_out - 1].astype(jnp.float32))
    elif x.ndim == 3:
        B, T, D = x.shape
        ab = dhbarrier_mlp(x.reshape(B * T, D), params, tm=tm,
                           compute_dtype=compute_dtype)
        ab = ab.reshape(B, T, -1)
        return (ab[:, :, :n_out - 1].astype(jnp.float32),
                ab[:, :, n_out - 1].astype(jnp.float32))
    raise ValueError("x must be 2-D or 3-D")


def init_params(key, n_control, latent_dim, h_dim):
    """Deterministic synthetic init of the 3 Linear layers (PyTorch-like uniform)."""
    hidden_dims = [latent_dim, h_dim, h_dim, n_control + 1]
    params = []
    for i in range(3):
        fan_in, fan_out = hidden_dims[i], hidden_dims[i + 1]
        key, kw, kb = jax.random.split(key, 3)
        bound = 1.0 / jnp.sqrt(fan_in)
        # Weight stored as (in, out) = transpose of torch's (out, in) layout.
        w = jax.random.uniform(kw, (fan_in, fan_out), jnp.float32, -bound, bound)
        b = jax.random.uniform(kb, (1, fan_out), jnp.float32, -bound, bound)
        params += [w, b]
    return tuple(params)


def reference_forward(x, params):
    """Pure-JAX f32 reference of the same MLP."""
    w1, b1, w2, b2, w3, b3 = params
    orig_shape = x.shape
    x2 = x.reshape(-1, orig_shape[-1])
    h = jnp.maximum(x2 @ w1 + b1, 0.0)
    h = jnp.maximum(h @ w2 + b2, 0.0)
    ab = jnp.tanh(h @ w3 + b3)
    ab = ab.reshape(*orig_shape[:-1], -1)
    return ab[..., :-1], ab[..., -1]


# TODO(synk): loss_function (label-masked einsum + hinge losses) is training-side
# code and intentionally not ported; only the module's forward pass is kernelized.

if __name__ == "__main__":
    n_control = 4
    latent_dim = 32
    h_dim = 128   # small h_dim for the demo (module default is 1024)

    key = jax.random.PRNGKey(0)
    kp, kx = jax.random.split(key)
    params = init_params(kp, n_control, latent_dim, h_dim)

    # 3-D input path: (batch, time, latent_dim)
    x = jax.random.normal(kx, (2, 8, latent_dim), jnp.float32)
    a_ref, b_ref = reference_forward(x, params)

    # bf16-operand fast path (f32 accumulation) -> loose tolerance.
    a, b = dhbarrier_forward(x, params)
    a = jax.block_until_ready(a)
    b = jax.block_until_ready(b)
    assert a.shape == (2, 8, n_control)
    assert b.shape == (2, 8)
    assert jnp.allclose(a, a_ref, atol=2e-2, rtol=0.0)
    assert jnp.allclose(b, b_ref, atol=2e-2, rtol=0.0)

    # f32-operand path -> tight tolerance against the reference.
    a32, b32 = dhbarrier_forward(x, params, compute_dtype=jnp.float32)
    jax.block_until_ready(b32)
    assert jnp.allclose(a32, a_ref, atol=1e-5, rtol=1e-5)
    assert jnp.allclose(b32, b_ref, atol=1e-5, rtol=1e-5)

    # 2-D input with a batch that is NOT a multiple of the row tile: exercises
    # the ragged last block that replaced the old wrapper-side jnp.pad.
    x2 = jax.random.normal(jax.random.PRNGKey(1), (6, latent_dim), jnp.float32)
    a2_ref, b2_ref = reference_forward(x2, params)
    a2, b2 = dhbarrier_forward(x2, params)
    jax.block_until_ready(b2)
    assert a2.shape == (6, n_control) and b2.shape == (6,)
    assert jnp.allclose(a2, a2_ref, atol=2e-2, rtol=0.0)
    assert jnp.allclose(b2, b2_ref, atol=2e-2, rtol=0.0)

    # Ragged batch on the f32 path -> tight tolerance (verifies masking exactly).
    a2f, b2f = dhbarrier_forward(x2, params, compute_dtype=jnp.float32)
    jax.block_until_ready(b2f)
    assert jnp.allclose(a2f, a2_ref, atol=1e-5, rtol=1e-5)
    assert jnp.allclose(b2f, b2_ref, atol=1e-5, rtol=1e-5)

    print("KERNEL_OK")
</pallas_src>

<mosaic_0001>
module attributes {stable_mosaic.version = 11 : i64} {
  func.func @_dhbarrier_kernel(%arg0: i32, %arg1: memref<16x32xbf16, #tpu.memory_space<vmem>>, %arg2: memref<32x128xbf16, #tpu.memory_space<vmem>>, %arg3: memref<1x128xbf16, #tpu.memory_space<vmem>>, %arg4: memref<128x128xbf16, #tpu.memory_space<vmem>>, %arg5: memref<1x128xbf16, #tpu.memory_space<vmem>>, %arg6: memref<128x128xbf16, #tpu.memory_space<vmem>>, %arg7: memref<1x128xf32, #tpu.memory_space<vmem>>, %arg8: memref<16x128xbf16, #tpu.memory_space<vmem>>) attributes {dimension_semantics = [#tpu.dimension_semantics<parallel>], iteration_bounds = array<i64: 1>, scalar_prefetch = 0 : i64, scratch_operands = 0 : i64, tpu.core_type = #tpu.core_type<tc>, window_params = [{transform_indices = @transform_0, window_bounds = array<i64: 16, 32>}, {pipeline_mode = #tpu.pipeline_mode<synchronous>, transform_indices = @transform_1, window_bounds = array<i64: 32, 128>}, {pipeline_mode = #tpu.pipeline_mode<synchronous>, transform_indices = @transform_2, window_bounds = array<i64: 1, 128>}, {pipeline_mode = #tpu.pipeline_mode<synchronous>, transform_indices = @transform_3, window_bounds = array<i64: 128, 128>}, {pipeline_mode = #tpu.pipeline_mode<synchronous>, transform_indices = @transform_4, window_bounds = array<i64: 1, 128>}, {pipeline_mode = #tpu.pipeline_mode<synchronous>, transform_indices = @transform_5, window_bounds = array<i64: 128, 128>}, {pipeline_mode = #tpu.pipeline_mode<synchronous>, transform_indices = @transform_6, window_bounds = array<i64: 1, 128>}, {transform_indices = @transform_7, window_bounds = array<i64: 16, 128>}]} {
    %c0 = arith.constant 0 : index
    %c0_0 = arith.constant 0 : index
    %0 = vector.load %arg1[%c0, %c0_0] : memref<16x32xbf16, #tpu.memory_space<vmem>>, vector<16x32xbf16>
    %c0_1 = arith.constant 0 : index
    %c0_2 = arith.constant 0 : index
    %1 = vector.load %arg2[%c0_1, %c0_2] : memref<32x128xbf16, #tpu.memory_space<vmem>>, vector<32x128xbf16>
    %cst = arith.constant dense<0.000000e+00> : vector<16x128xf32>
    %2 = tpu.matmul %0, %1, %cst {dimension_numbers = #tpu.dot_dimension_numbers<[1], [0], [0], [1], [0, 0, 1, 1], [], []>} : vector<16x32xbf16>, vector<32x128xbf16>, vector<16x128xf32> -> vector<16x128xf32>
    %3 = arith.truncf %2 : vector<16x128xf32> to vector<16x128xbf16>
    %c0_3 = arith.constant 0 : index
    %c0_4 = arith.constant 0 : index
    %4 = vector.load %arg3[%c0_3, %c0_4] : memref<1x128xbf16, #tpu.memory_space<vmem>>, vector<1x128xbf16>
    %5 = vector.broadcast %4 : vector<1x128xbf16> to vector<16x128xbf16>
    %6 = arith.addf %3, %5 : vector<16x128xbf16>
    %cst_5 = arith.constant 0.000000e+00 : bf16
    %7 = vector.broadcast %cst_5 : bf16 to vector<16x128xbf16>
    %8 = arith.maximumf %6, %7 : vector<16x128xbf16>
    %c0_6 = arith.constant 0 : index
    %c0_7 = arith.constant 0 : index
    %9 = vector.load %arg4[%c0_6, %c0_7] : memref<128x128xbf16, #tpu.memory_space<vmem>>, vector<128x128xbf16>
    %cst_8 = arith.constant dense<0.000000e+00> : vector<16x128xf32>
    %10 = tpu.matmul %8, %9, %cst_8 {dimension_numbers = #tpu.dot_dimension_numbers<[1], [0], [0], [1], [0, 0, 1, 1], [], []>} : vector<16x128xbf16>, vector<128x128xbf16>, vector<16x128xf32> -> vector<16x128xf32>
    %11 = arith.truncf %10 : vector<16x128xf32> to vector<16x128xbf16>
    %c0_9 = arith.constant 0 : index
    %c0_10 = arith.constant 0 : index
    %12 = vector.load %arg5[%c0_9, %c0_10] : memref<1x128xbf16, #tpu.memory_space<vmem>>, vector<1x128xbf16>
    %13 = vector.broadcast %12 : vector<1x128xbf16> to vector<16x128xbf16>
    %14 = arith.addf %11, %13 : vector<16x128xbf16>
    %cst_11 = arith.constant 0.000000e+00 : bf16
    %15 = vector.broadcast %cst_11 : bf16 to vector<16x128xbf16>
    %16 = arith.maximumf %14, %15 : vector<16x128xbf16>
    %c0_12 = arith.constant 0 : index
    %c0_13 = arith.constant 0 : index
    %17 = vector.load %arg6[%c0_12, %c0_13] : memref<128x128xbf16, #tpu.memory_space<vmem>>, vector<128x128xbf16>
    %cst_14 = arith.constant dense<0.000000e+00> : vector<16x128xf32>
    %18 = tpu.matmul %16, %17, %cst_14 {dimension_numbers = #tpu.dot_dimension_numbers<[1], [0], [0], [1], [0, 0, 1, 1], [], []>} : vector<16x128xbf16>, vector<128x128xbf16>, vector<16x128xf32> -> vector<16x128xf32>
    %c0_15 = arith.constant 0 : index
    %c0_16 = arith.constant 0 : index
    %19 = vector.load %arg7[%c0_15, %c0_16] : memref<1x128xf32, #tpu.memory_space<vmem>>, vector<1x128xf32>
    %20 = vector.broadcast %19 : vector<1x128xf32> to vector<16x128xf32>
    %21 = arith.addf %18, %20 : vector<16x128xf32>
    %22 = math.tanh %21 : vector<16x128xf32>
    %23 = arith.truncf %22 : vector<16x128xf32> to vector<16x128xbf16>
    %c0_17 = arith.constant 0 : index
    %c0_18 = arith.constant 0 : index
    %24 = vector.load %arg8[%c0_17, %c0_18] : memref<16x128xbf16, #tpu.memory_space<vmem>>, vector<16x128xbf16>
    tpu.vector_store %arg8[%c0_17, %c0_18], %23 {strides = array<i32>} : memref<16x128xbf16, #tpu.memory_space<vmem>>, vector<16x128xbf16>,
    return
  }
  func.func @transform_0(%arg0: i32) -> (i32, i32) {
    %c0_i32 = arith.constant 0 : i32
    %c0_i32_0 = arith.constant 0 : i32
    return %arg0, %c0_i32 : i32, i32
  }
  func.func @transform_1(%arg0: i32) -> (i32, i32) {
    %c0_i32 = arith.constant 0 : i32
    %c0_i32_0 = arith.constant 0 : i32
    %c0_i32_1 = arith.constant 0 : i32
    return %c0_i32, %c0_i32_0 : i32, i32
  }
  func.func @transform_2(%arg0: i32) -> (i32, i32) {
    %c0_i32 = arith.constant 0 : i32
    %c0_i32_0 = arith.constant 0 : i32
    %c0_i32_1 = arith.constant 0 : i32
    return %c0_i32, %c0_i32_0 : i32, i32
  }
  func.func @transform_3(%arg0: i32) -> (i32, i32) {
    %c0_i32 = arith.constant 0 : i32
    %c0_i32_0 = arith.constant 0 : i32
    %c0_i32_1 = arith.constant 0 : i32
    return %c0_i32, %c0_i32_0 : i32, i32
  }
  func.func @transform_4(%arg0: i32) -> (i32, i32) {
    %c0_i32 = arith.constant 0 : i32
    %c0_i32_0 = arith.constant 0 : i32
    %c0_i32_1 = arith.constant 0 : i32
    return %c0_i32, %c0_i32_0 : i32, i32
  }
  func.func @transform_5(%arg0: i32) -> (i32, i32) {
    %c0_i32 = arith.constant 0 : i32
    %c0_i32_0 = arith.constant 0 : i32
    %c0_i32_1 = arith.constant 0 : i32
    return %c0_i32, %c0_i32_0 : i32, i32
  }
  func.func @transform_6(%arg0: i32) -> (i32, i32) {
    %c0_i32 = arith.constant 0 : i32
    %c0_i32_0 = arith.constant 0 : i32
    %c0_i32_1 = arith.constant 0 : i32
    return %c0_i32, %c0_i32_0 : i32, i32
  }
  func.func @transform_7(%arg0: i32) -> (i32, i32) {
    %c0_i32 = arith.constant 0 : i32
    %c0_i32_0 = arith.constant 0 : i32
    return %arg0, %c0_i32 : i32, i32
  }
}

module attributes {stable_mosaic.version = 11 : i64} {
  func.func @_dhbarrier_kernel(%arg0: i32, %arg1: memref<16x32xbf16, #tpu.memory_space<vmem>>, %arg2: memref<32x128xbf16, #tpu.memory_space<vmem>>, %arg3: memref<1x128xbf16, #tpu.memory_space<vmem>>, %arg4: memref<128x128xbf16, #tpu.memory_space<vmem>>, %arg5: memref<1x128xbf16, #tpu.memory_space<vmem>>, %arg6: memref<128x128xbf16, #tpu.memory_space<vmem>>, %arg7: memref<1x128xf32, #tpu.memory_space<vmem>>, %arg8: memref<16x128xbf16, #tpu.memory_space<vmem>>) attributes {dimension_semantics = [#tpu.dimension_semantics<parallel>], iteration_bounds = array<i64: 1>, scalar_prefetch = 0 : i64, scratch_operands = 0 : i64, tpu.core_type = #tpu.core_type<tc>, window_params = [{transform_indices = @transform_0, window_bounds = array<i64: 16, 32>}, {pipeline_mode = #tpu.pipeline_mode<synchronous>, transform_indices = @transform_1, window_bounds = array<i64: 32, 128>}, {pipeline_mode = #tpu.pipeline_mode<synchronous>, transform_indices = @transform_2, window_bounds = array<i64: 1, 128>}, {pipeline_mode = #tpu.pipeline_mode<synchronous>, transform_indices = @transform_3, window_bounds = array<i64: 128, 128>}, {pipeline_mode = #tpu.pipeline_mode<synchronous>, transform_indices = @transform_4, window_bounds = array<i64: 1, 128>}, {pipeline_mode = #tpu.pipeline_mode<synchronous>, transform_indices = @transform_5, window_bounds = array<i64: 128, 128>}, {pipeline_mode = #tpu.pipeline_mode<synchronous>, transform_indices = @transform_6, window_bounds = array<i64: 1, 128>}, {transform_indices = @transform_7, window_bounds = array<i64: 16, 128>}]} {
    %c0 = arith.constant 0 : index
    %c0_0 = arith.constant 0 : index
    %0 = vector.load %arg1[%c0, %c0_0] : memref<16x32xbf16, #tpu.memory_space<vmem>>, vector<16x32xbf16>
    %c0_1 = arith.constant 0 : index
    %c0_2 = arith.constant 0 : index
    %1 = vector.load %arg2[%c0_1, %c0_2] : memref<32x128xbf16, #tpu.memory_space<vmem>>, vector<32x128xbf16>
    %cst = arith.constant dense<0.000000e+00> : vector<16x128xf32>
    %2 = tpu.matmul %0, %1, %cst {dimension_numbers = #tpu.dot_dimension_numbers<[1], [0], [0], [1], [0, 0, 1, 1], [], []>} : vector<16x32xbf16>, vector<32x128xbf16>, vector<16x128xf32> -> vector<16x128xf32>
    %3 = arith.truncf %2 : vector<16x128xf32> to vector<16x128xbf16>
    %c0_3 = arith.constant 0 : index
    %c0_4 = arith.constant 0 : index
    %4 = vector.load %arg3[%c0_3, %c0_4] : memref<1x128xbf16, #tpu.memory_space<vmem>>, vector<1x128xbf16>
    %5 = vector.broadcast %4 : vector<1x128xbf16> to vector<16x128xbf16>
    %6 = arith.addf %3, %5 : vector<16x128xbf16>
    %cst_5 = arith.constant 0.000000e+00 : bf16
    %7 = vector.broadcast %cst_5 : bf16 to vector<16x128xbf16>
    %8 = arith.maximumf %6, %7 : vector<16x128xbf16>
    %c0_6 = arith.constant 0 : index
    %c0_7 = arith.constant 0 : index
    %9 = vector.load %arg4[%c0_6, %c0_7] : memref<128x128xbf16, #tpu.memory_space<vmem>>, vector<128x128xbf16>
    %cst_8 = arith.constant dense<0.000000e+00> : vector<16x128xf32>
    %10 = tpu.matmul %8, %9, %cst_8 {dimension_numbers = #tpu.dot_dimension_numbers<[1], [0], [0], [1], [0, 0, 1, 1], [], []>} : vector<16x128xbf16>, vector<128x128xbf16>, vector<16x128xf32> -> vector<16x128xf32>
    %11 = arith.truncf %10 : vector<16x128xf32> to vector<16x128xbf16>
    %c0_9 = arith.constant 0 : index
    %c0_10 = arith.constant 0 : index
    %12 = vector.load %arg5[%c0_9, %c0_10] : memref<1x128xbf16, #tpu.memory_space<vmem>>, vector<1x128xbf16>
    %13 = vector.broadcast %12 : vector<1x128xbf16> to vector<16x128xbf16>
    %14 = arith.addf %11, %13 : vector<16x128xbf16>
    %cst_11 = arith.constant 0.000000e+00 : bf16
    %15 = vector.broadcast %cst_11 : bf16 to vector<16x128xbf16>
    %16 = arith.maximumf %14, %15 : vector<16x128xbf16>
    %c0_12 = arith.constant 0 : index
    %c0_13 = arith.constant 0 : index
    %17 = vector.load %arg6[%c0_12, %c0_13] : memref<128x128xbf16, #tpu.memory_space<vmem>>, vector<128x128xbf16>
    %cst_14 = arith.constant dense<0.000000e+00> : vector<16x128xf32>
    %18 = tpu.matmul %16, %17, %cst_14 {dimension_numbers = #tpu.dot_dimension_numbers<[1], [0], [0], [1], [0, 0, 1, 1], [], []>} : vector<16x128xbf16>, vector<128x128xbf16>, vector<16x128xf32> -> vector<16x128xf32>
    %c0_15 = arith.constant 0 : index
    %c0_16 = arith.constant 0 : index
    %19 = vector.load %arg7[%c0_15, %c0_16] : memref<1x128xf32, #tpu.memory_space<vmem>>, vector<1x128xf32>
    %20 = vector.broadcast %19 : vector<1x128xf32> to vector<16x128xf32>
    %21 = arith.addf %18, %20 : vector<16x128xf32>
    %22 = math.tanh %21 : vector<16x128xf32>
    %23 = arith.truncf %22 : vector<16x128xf32> to vector<16x128xbf16>
    %c0_17 = arith.constant 0 : index
    %c0_18 = arith.constant 0 : index
    %24 = vector.load %arg8[%c0_17, %c0_18] : memref<16x128xbf16, #tpu.memory_space<vmem>>, vector<16x128xbf16>
    tpu.vector_store %arg8[%c0_17, %c0_18], %23 {strides = array<i32>} : memref<16x128xbf16, #tpu.memory_space<vmem>>, vector<16x128xbf16>,
    return
  }
  func.func @transform_0(%arg0: i32) -> (i32, i32) {
    %c0_i32 = arith.constant 0 : i32
    %c0_i32_0 = arith.constant 0 : i32
    return %arg0, %c0_i32 : i32, i32
  }
  func.func @transform_1(%arg0: i32) -> (i32, i32) {
    %c0_i32 = arith.constant 0 : i32
    %c0_i32_0 = arith.constant 0 : i32
    %c0_i32_1 = arith.constant 0 : i32
    return %c0_i32, %c0_i32_0 : i32, i32
  }
  func.func @transform_2(%arg0: i32) -> (i32, i32) {
    %c0_i32 = arith.constant 0 : i32
    %c0_i32_0 = arith.constant 0 : i32
    %c0_i32_1 = arith.constant 0 : i32
    return %c0_i32, %c0_i32_0 : i32, i32
  }
  func.func @transform_3(%arg0: i32) -> (i32, i32) {
    %c0_i32 = arith.constant 0 : i32
    %c0_i32_0 = arith.constant 0 : i32
    %c0_i32_1 = arith.constant 0 : i32
    return %c0_i32, %c0_i32_0 : i32, i32
  }
  func.func @transform_4(%arg0: i32) -> (i32, i32) {
    %c0_i32 = arith.constant 0 : i32
    %c0_i32_0 = arith.constant 0 : i32
    %c0_i32_1 = arith.constant 0 : i32
    return %c0_i32, %c0_i32_0 : i32, i32
  }
  func.func @transform_5(%arg0: i32) -> (i32, i32) {
    %c0_i32 = arith.constant 0 : i32
    %c0_i32_0 = arith.constant 0 : i32
    %c0_i32_1 = arith.constant 0 : i32
    return %c0_i32, %c0_i32_0 : i32, i32
  }
  func.func @transform_6(%arg0: i32) -> (i32, i32) {
    %c0_i32 = arith.constant 0 : i32
    %c0_i32_0 = arith.constant 0 : i32
    %c0_i32_1 = arith.constant 0 : i32
    return %c0_i32, %c0_i32_0 : i32, i32
  }
  func.func @transform_7(%arg0: i32) -> (i32, i32) {
    %c0_i32 = arith.constant 0 : i32
    %c0_i32_0 = arith.constant 0 : i32
    return %arg0, %c0_i32 : i32, i32
  }
}

</mosaic_0001>

<bundles_post_ra>
// kernel: tpu_custom_call.1
= control target key start
LH: loop header
LB: loop body
LE: loop exit
PB: predicated region body
PF: predicated region fallthrough
CT: control target
= control target key end

     0   :  { %12 = vsyncpa [#allocation3], 0  ;;  %s774_s0 = inlined_call_operand.hbm [shape: bf16[16,32], index: 0, kind: input, shape index: {}]   ;;  %s775_s1 = inlined_call_operand.hbm [shape: bf16[32,128], index: 1, kind: input, shape index: {}]   ;;  %s776_s2 = inlined_call_operand.vmem [shape: bf16[1,128], index: 2, kind: input, shape index: {}]   ;;  %s777_s3 = inlined_call_operand.hbm [shape: bf16[128,128], index: 3, kind: input, shape index: {}]   ;;  %s778_s4 = inlined_call_operand.vmem [shape: bf16[1,128], index: 4, kind: input, shape index: {}]   ;;  %s779_s5 = inlined_call_operand.hbm [shape: bf16[128,128], index: 5, kind: input, shape index: {}]   ;;  %s780_s6 = inlined_call_operand.vmem [shape: f32[1,128], index: 6, kind: input, shape index: {}]   ;;  %s781_s7 = inlined_call_operand.hbm [shape: bf16[16,128], index: 7, kind: output, shape index: {}]  }
   0x1   :  { %13 = vsyncpa [#allocation6], 0 }
   0x2   :  { %14 = vsyncpa [#allocation9], 0 }
   0x3   :  { %15 = vsyncpa [#allocation4], 0  ;;  %s661_s24 = smov [#allocation5]   ;;  %s662_s26 = smov [#allocation2]  }
   0x4   :  { %s33_s25 = sshll.u32 %s661_s24, 4  ;;  %s21_s27 = sshll.u32 %s662_s26, 4  ;;  %s34_s25 = int_to_ptr.vmem [resolvable:$true] %s33_s25  ;;  %s22_s27 = int_to_ptr.vmem [resolvable:$true] %s21_s27 }
   0x5   :  { %s561_s28 = scalar_lea.vmem %s34_s25, 256  ;;  %p566_p1 = scmp.lt.s32.totalorder %s34_s25, %s34_s25 }
   0x6   :  { %p562_p0 = scmp.ne.s32.totalorder %s34_s25, %s561_s28  ;;  %p567_p2 = scmp.lt.s32.totalorder %s561_s28, %s561_s28 }
   0x8   :  { %p568_p3 = por %p567_p2, %p566_p1 }
   0xa   :  { %p569_p4 = pnand %p568_p3, %p562_p0 }
   0xc   :  { %572 = shalt.err (!%p569_p4)
}
   0xd   :  { %s663_s29 = smov 64   ;;  %s664_s30 = smov 4  }
   0xe   :  { %39 = dma.hbm_to_vmem [thread:$0]  %s775_s1, 256, %s34_s25, [#allocation6], %s663_s29, %s663_s29, %s664_s30  }
   0xf   :  { %s581_s10 = scalar_lea.vmem %s22_s27, 128  ;;  %p586_p6 = scmp.lt.s32.totalorder %s22_s27, %s22_s27 }
  0x10   :  { %p582_p5 = scmp.ne.s32.totalorder %s22_s27, %s581_s10  ;;  %p587_p7 = scmp.lt.s32.totalorder %s581_s10, %s581_s10 }
  0x12   :  { %p588_p8 = por %p587_p7, %p586_p6 }
  0x14   :  { %p589_p9 = pnand %p588_p8, %p582_p5 }
  0x16   :  { %592 = shalt.err (!%p589_p9)
}
  0x17   :  { %27 = dma.hbm_to_vmem [thread:$0]  %s774_s0, 128, %s22_s27, [#allocation3], %s663_s29, %s663_s29, %s664_s30  }
  0x18   :  { %s665_s13 = smov [#allocation7]   ;;  %s666_s15 = smov [#allocation8]  }
  0x19   :  { %s47_s14 = sshll.u32 %s665_s13, 4  ;;  %s61_s16 = sshll.u32 %s666_s15, 4  ;;  %s48_s14 = int_to_ptr.vmem [resolvable:$true] %s47_s14  ;;  %s62_s16 = int_to_ptr.vmem [resolvable:$true] %s61_s16 }
  0x1a   :  { %s601_s1 = scalar_lea.vmem %s48_s14, 1024  ;;  %p606_p11 = scmp.lt.s32.totalorder %s48_s14, %s48_s14 }
  0x1b   :  { %p602_p10 = scmp.ne.s32.totalorder %s48_s14, %s601_s1  ;;  %p607_p12 = scmp.lt.s32.totalorder %s601_s1, %s601_s1 }
  0x1d   :  { %p608_p13 = por %p607_p12, %p606_p11 }
  0x1f   :  { %p609_p0 = pnand %p608_p13, %p602_p10 }
  0x21   :  { %612 = shalt.err (!%p609_p0)
}
  0x22   :  { %53 = dma.hbm_to_vmem [thread:$0]  %s777_s3, 1024, %s48_s14, [#allocation6], %s663_s29, %s663_s29, %s664_s30  }
  0x23   :  { %s621_s0 = scalar_lea.vmem %s62_s16, 1024  ;;  %p626_p2 = scmp.lt.s32.totalorder %s62_s16, %s62_s16 }
  0x24   :  { %p622_p1 = scmp.ne.s32.totalorder %s62_s16, %s621_s0  ;;  %p627_p3 = scmp.lt.s32.totalorder %s621_s0, %s621_s0 }
  0x26   :  { %p628_p4 = por %p627_p3, %p626_p2 }
  0x28   :  { %p629_p5 = pnand %p628_p4, %p622_p1 }
  0x2a   :  { %632 = shalt.err (!%p629_p5)
}
  0x2b   :  { %67 = dma.hbm_to_vmem [thread:$0]  %s779_s5, 1024, %s62_s16, [#allocation9], %s663_s29, %s663_s29, %s664_s30  }
  0x2c   :  { %653 = dma.done.wait [#allocation3], 128  }
  0x2d   :  { %654 = vsyncadd [#allocation3], 4294967168 }
  0x2e   :  { %655 = dma.done.wait [#allocation6], 1280  }
  0x2f   :  { %656 = vsyncadd [#allocation6], 4294966016 }
  0x30   :  { %657 = dma.done.wait [#allocation9], 1024  }
  0x31   :  { %658 = vsyncadd [#allocation9], 4294966272  ;;  %v667_v0 = vmov 0.0   ;;  %vm668_vm0 = vmmov 0   ;;  %v530_v1 = vld [vmem:[#allocation5 + $0x8] sm:$0xff]   ;;  %v531_v2 = vld [vmem:[#allocation5] sm:$0xff]   ;;  %v156_v17 = vlaneseq }
  0x32   :  { %472 = vmatprep.subr.bf16.mxu0 %v667_v0  ;;  %476 = vmatprep.mubr.msk.bf16.mxu0 %vm668_vm0, %v667_v0  ;;  %v533_v3 = vld [vmem:[#allocation7 + $0x38] sm:$0xff]   ;;  %v532_v4 = vld [vmem:[#allocation2] sm:$0xff]   ;;  %v534_v5 = vld [vmem:[#allocation7 + $0x30] sm:$0xff]   ;;  %vm106_vm1 = vcmask 261120   ;;  %v669_v29 = vmov 0  }
  0x33   :  { %480 = vmatprep.subr.bf16.mxu1 %v667_v0  ;;  %496 = vmatprep.mubr.msk.bf16.mxu1 %vm668_vm0, %v667_v0  ;;  %v535_v6 = vld [vmem:[#allocation7 + $0x28] sm:$0xff]   ;;  %v536_v7 = vld [vmem:[#allocation7 + $0x20] sm:$0xff]   ;;  %v537_v8 = vld [vmem:[#allocation7 + $0x18] sm:$0xff]   ;;  %v157_v18 = vshrl.u32 %v156_v17, 7 }
  0x34   :  { %473 = vmatpush3.bf16.msra.mxu0 %v530_v1  ;;  %481 = vmatpush3.bf16.msra.mxu1 %v533_v3  ;;  %v538_v9 = vld [vmem:[#allocation7 + $0x10] sm:$0xff]   ;;  %v539_v10 = vld [vmem:[#allocation7 + $0x8] sm:$0xff]   ;;  %v540_v11 = vld [vmem:[#allocation7] sm:$0xff]  }
  0x35   :  { %474 = vmatprep.subr.bf16.mxu0 %v667_v0  ;;  %482 = vmatprep.subr.bf16.mxu1 %v667_v0  ;;  %v541_v12 = vld [vmem:[#allocation8 + $0x38] sm:$0xff]   ;;  %v542_v13 = vld [vmem:[#allocation8 + $0x30] sm:$0xff]   ;;  %v543_v14 = vld [vmem:[#allocation8 + $0x28] sm:$0xff]   ;;  %v158_v21 = vsub.s32 0, %v157_v18 }
  0x36   :  { %v544_v15 = vld [vmem:[#allocation8 + $0x20] sm:$0xff]   ;;  %v545_v16 = vld [vmem:[#allocation8 + $0x18] sm:$0xff]   ;;  %v152_v19 = vld [vmem:[%s776_s2] sm:$0x1] }
  0x37   :  { %v154_v20 = vpack.i.b16 %v152_v19, %v152_v19  ;;  %v546_v31 = vld [vmem:[#allocation8 + $0x10] sm:$0xff]   ;;  %v547_v32 = vld [vmem:[#allocation8 + $0x8] sm:$0xff]   ;;  %v548_v33 = vld [vmem:[#allocation8] sm:$0xff]  }
  0x38   :  { %475 = vmatpush3.bf16.msra.mxu0 %v531_v2  ;;  %483 = vmatpush3.bf16.msra.mxu1 %v534_v5  ;;  %v268_v34 = vld [vmem:[%s778_s4] sm:$0x1]  ;;  %s670_s4 = smov [#allocation10]  }
  0x39   :  { %500 = vmatprep.subr.bf16.mxu0 %v667_v0  ;;  %484 = vmatprep.subr.bf16.mxu1 %v667_v0  ;;  %v159_v24 = vrot.slane %v154_v20, %v158_v21  ;;  %v270_v35 = vpack.i.b16 %v268_v34, %v268_v34  ;;  %v433_v44 = vld [vmem:[%s780_s6] ss:$0 sm:$0xff]  ;;  %s407_s24 = sshll.u32 %s670_s4, 4  ;;  %s408_s24 = int_to_ptr.vmem [resolvable:$true] %s407_s24 }
  0x3a   :  { %s633_s25 = scalar_lea.vmem %s408_s24, 128  ;;  %p638_p7 = scmp.lt.s32.totalorder %s408_s24, %s408_s24 }
  0x3b   :  { %477 = vmatmul.mubr.msk.bf16.vlgmr.msra.gmra.mxu0 %vm106_vm1, %v532_v4  ;;  %v275_v38 = vrot.slane %v270_v35, %v158_v21  ;;  %p634_p6 = scmp.ne.s32.totalorder %s408_s24, %s633_s25  ;;  %p639_p8 = scmp.lt.s32.totalorder %s633_s25, %s633_s25 }
  0x3c   :  { %516 = vmatprep.mubr.msk.bf16.mxu0 %vm668_vm0, %v667_v0  ;;  %485 = vmatpush3.bf16.msra.mxu1 %v535_v6 }
  0x3d   :  { %486 = vmatprep.subr.bf16.mxu1 %v667_v0  ;;  %501 = vmatpush3.bf16.msra.mxu0 %v541_v12  ;;  %p640_p9 = por %p639_p8, %p638_p7 }
  0x3e   :  { %502 = vmatprep.subr.bf16.mxu0 %v667_v0 }
  0x3f   :  { %p641_p10 = pnand %p640_p9, %p634_p6 }
  0x40   :  { %487 = vmatpush3.bf16.msra.mxu1 %v536_v7 }
  0x41   :  { %488 = vmatprep.subr.bf16.mxu1 %v667_v0  ;;  %503 = vmatpush3.bf16.msra.mxu0 %v542_v13 }
  0x42   :  { %504 = vmatprep.subr.bf16.mxu0 %v667_v0 }
  0x44   :  { %489 = vmatpush3.bf16.msra.mxu1 %v537_v8 }
  0x45   :  { %490 = vmatprep.subr.bf16.mxu1 %v667_v0  ;;  %505 = vmatpush3.bf16.msra.mxu0 %v543_v14 }
  0x46   :  { %506 = vmatprep.subr.bf16.mxu0 %v667_v0 }
  0x48   :  { %491 = vmatpush3.bf16.msra.mxu1 %v538_v9 }
  0x49   :  { %492 = vmatprep.subr.bf16.mxu1 %v667_v0  ;;  %507 = vmatpush3.bf16.msra.mxu0 %v544_v15 }
  0x4a   :  { %508 = vmatprep.subr.bf16.mxu0 %v667_v0 }
  0x4c   :  { %493 = vmatpush3.bf16.msra.mxu1 %v539_v10 }
  0x4d   :  { %494 = vmatprep.subr.bf16.mxu1 %v667_v0  ;;  %509 = vmatpush3.bf16.msra.mxu0 %v545_v16 }
  0x4e   :  { %510 = vmatprep.subr.bf16.mxu0 %v667_v0 }
  0x50   :  { %495 = vmatpush3.bf16.msra.mxu1 %v540_v11 }
  0x51   :  { %511 = vmatpush3.bf16.msra.mxu0 %v546_v31 }
  0x52   :  { %512 = vmatprep.subr.bf16.mxu0 %v667_v0 }
  0x55   :  { %513 = vmatpush3.bf16.msra.mxu0 %v547_v32 }
  0x56   :  { %514 = vmatprep.subr.bf16.mxu0 %v667_v0 }
  0x59   :  { %515 = vmatpush3.bf16.msra.mxu0 %v548_v33 }
  0xfb   :  { %v144_v22 = vpop.f32.mrf.mxu0 }
  0xfd   :  { %v478_v23 = vpop.f32.mrf.mxu0 }
  0xff   :  { %v147_v25 = vpop.f32.mrf.mxu0 }
 0x100   :  { %v151_v26 = vpack.c.bf16 %v147_v25, %v144_v22 }
 0x101   :  { %v479_v27 = vpop.f32.mrf.mxu0 }
 0x102   :  { %v160_v28 = vadd.bf16 %v159_v24, %v151_v26 }
 0x104   :  { %v161_v30 = vmax.bf16 %v669_v29, %v160_v28 }
 0x106   :  { %497 = vmatmul.mubr.bf16.vlgmr.msra.gmra.mxu1 %v161_v30 }
 0x1c6   :  { %v260_v36 = vpop.f32.mrf.mxu1 }
 0x1c8   :  { %v498_v37 = vpop.f32.mrf.mxu1 }
 0x1ca   :  { %v263_v39 = vpop.f32.mrf.mxu1 }
 0x1cb   :  { %v267_v40 = vpack.c.bf16 %v263_v39, %v260_v36 }
 0x1cc   :  { %v499_v41 = vpop.f32.mrf.mxu1 }
 0x1cd   :  { %v276_v42 = vadd.bf16 %v275_v38, %v267_v40 }
 0x1cf   :  { %v277_v43 = vmax.bf16 %v669_v29, %v276_v42 }
 0x1d1   :  { %517 = vmatmul.mubr.bf16.vlgmr.msra.gmra.mxu0 %v277_v43 }
 0x291   :  { %v383_v45 = vpop.f32.mrf.mxu0 }
 0x292   :  { %v384_v46 = vadd.f32 %v433_v44, %v383_v45 }
 0x293   :  { %v518_v47 = vpop.f32.mrf.mxu0 }
 0x294   :  { %549 = vtanh.f32 %v384_v46 }
 0x295   :  { %v386_v48 = vpop.f32.mrf.mxu0 }
 0x296   :  { %v387_v49 = vadd.f32 %v433_v44, %v386_v48 }
 0x297   :  { %v519_v50 = vpop.f32.mrf.mxu0 }
 0x298   :  { %551 = vtanh.f32 %v387_v49 }
 0x2a1   :  { %v550_v51 = vpop.eup %549 }
 0x2a5   :  { %v552_v52 = vpop.eup %551 }
 0x2a6   :  { %v449_v53 = vpack.c.bf16 %v552_v52, %v550_v51 }
 0x2a8   :  { %450 = vst [vmem:[#allocation10] sm:$0xff] %v449_v53  }
 0x2a9   :  { %644 = shalt.err (!%p641_p10)
}
 0x2aa   :  { %413 = dma.vmem_to_hbm [thread:$0]  %s408_s24, 128, %s781_s7, [#allocation4], %s663_s29, %s663_s29, %s664_s30  }
 0x2ab   :  { %659 = dma.done.wait [#allocation4], 128  }
 0x2ac   :  { %660 = vsyncadd [#allocation4], 4294967168 }
 0x2ad   :  { %417 = vsyncpa [#allocation3], 1 }
 0x2ae   :  { %418 = vsyncpa [#allocation6], 1 }
 0x2af   :  { %419 = vsyncpa [#allocation9], 1 }
 0x2b0   :  { %420 = vsyncpa [#allocation4], 1 }

// kernel: tpu_custom_call.1
= control target key start
LH: loop header
LB: loop body
LE: loop exit
PB: predicated region body
PF: predicated region fallthrough
CT: control target
= control target key end

     0   :  { %12 = vsyncpa [#allocation3], 0  ;;  %s774_s0 = inlined_call_operand.hbm [shape: bf16[16,32], index: 0, kind: input, shape index: {}]   ;;  %s775_s1 = inlined_call_operand.hbm [shape: bf16[32,128], index: 1, kind: input, shape index: {}]   ;;  %s776_s2 = inlined_call_operand.vmem [shape: bf16[1,128], index: 2, kind: input, shape index: {}]   ;;  %s777_s3 = inlined_call_operand.hbm [shape: bf16[128,128], index: 3, kind: input, shape index: {}]   ;;  %s778_s4 = inlined_call_operand.vmem [shape: bf16[1,128], index: 4, kind: input, shape index: {}]   ;;  %s779_s5 = inlined_call_operand.hbm [shape: bf16[128,128], index: 5, kind: input, shape index: {}]   ;;  %s780_s6 = inlined_call_operand.vmem [shape: f32[1,128], index: 6, kind: input, shape index: {}]   ;;  %s781_s7 = inlined_call_operand.hbm [shape: bf16[16,128], index: 7, kind: output, shape index: {}]  }
   0x1   :  { %13 = vsyncpa [#allocation6], 0 }
   0x2   :  { %14 = vsyncpa [#allocation9], 0 }
   0x3   :  { %15 = vsyncpa [#allocation4], 0  ;;  %s661_s24 = smov [#allocation5]   ;;  %s662_s26 = smov [#allocation2]  }
   0x4   :  { %s33_s25 = sshll.u32 %s661_s24, 4  ;;  %s21_s27 = sshll.u32 %s662_s26, 4  ;;  %s34_s25 = int_to_ptr.vmem [resolvable:$true] %s33_s25  ;;  %s22_s27 = int_to_ptr.vmem [resolvable:$true] %s21_s27 }
   0x5   :  { %s561_s28 = scalar_lea.vmem %s34_s25, 256  ;;  %p566_p1 = scmp.lt.s32.totalorder %s34_s25, %s34_s25 }
   0x6   :  { %p562_p0 = scmp.ne.s32.totalorder %s34_s25, %s561_s28  ;;  %p567_p2 = scmp.lt.s32.totalorder %s561_s28, %s561_s28 }
   0x8   :  { %p568_p3 = por %p567_p2, %p566_p1 }
   0xa   :  { %p569_p4 = pnand %p568_p3, %p562_p0 }
   0xc   :  { %572 = shalt.err (!%p569_p4)
}
   0xd   :  { %s663_s29 = smov 64   ;;  %s664_s30 = smov 4  }
   0xe   :  { %39 = dma.hbm_to_vmem [thread:$0]  %s775_s1, 256, %s34_s25, [#allocation6], %s663_s29, %s663_s29, %s664_s30  }
   0xf   :  { %s581_s10 = scalar_lea.vmem %s22_s27, 128  ;;  %p586_p6 = scmp.lt.s32.totalorder %s22_s27, %s22_s27 }
  0x10   :  { %p582_p5 = scmp.ne.s32.totalorder %s22_s27, %s581_s10  ;;  %p587_p7 = scmp.lt.s32.totalorder %s581_s10, %s581_s10 }
  0x12   :  { %p588_p8 = por %p587_p7, %p586_p6 }
  0x14   :  { %p589_p9 = pnand %p588_p8, %p582_p5 }
  0x16   :  { %592 = shalt.err (!%p589_p9)
}
  0x17   :  { %27 = dma.hbm_to_vmem [thread:$0]  %s774_s0, 128, %s22_s27, [#allocation3], %s663_s29, %s663_s29, %s664_s30  }
  0x18   :  { %s665_s13 = smov [#allocation7]   ;;  %s666_s15 = smov [#allocation8]  }
  0x19   :  { %s47_s14 = sshll.u32 %s665_s13, 4  ;;  %s61_s16 = sshll.u32 %s666_s15, 4  ;;  %s48_s14 = int_to_ptr.vmem [resolvable:$true] %s47_s14  ;;  %s62_s16 = int_to_ptr.vmem [resolvable:$true] %s61_s16 }
  0x1a   :  { %s601_s1 = scalar_lea.vmem %s48_s14, 1024  ;;  %p606_p11 = scmp.lt.s32.totalorder %s48_s14, %s48_s14 }
  0x1b   :  { %p602_p10 = scmp.ne.s32.totalorder %s48_s14, %s601_s1  ;;  %p607_p12 = scmp.lt.s32.totalorder %s601_s1, %s601_s1 }
  0x1d   :  { %p608_p13 = por %p607_p12, %p606_p11 }
  0x1f   :  { %p609_p0 = pnand %p608_p13, %p602_p10 }
  0x21   :  { %612 = shalt.err (!%p609_p0)
}
  0x22   :  { %53 = dma.hbm_to_vmem [thread:$0]  %s777_s3, 1024, %s48_s14, [#allocation6], %s663_s29, %s663_s29, %s664_s30  }
  0x23   :  { %s621_s0 = scalar_lea.vmem %s62_s16, 1024  ;;  %p626_p2 = scmp.lt.s32.totalorder %s62_s16, %s62_s16 }
  0x24   :  { %p622_p1 = scmp.ne.s32.totalorder %s62_s16, %s621_s0  ;;  %p627_p3 = scmp.lt.s32.totalorder %s621_s0, %s621_s0 }
  0x26   :  { %p628_p4 = por %p627_p3, %p626_p2 }
  0x28   :  { %p629_p5 = pnand %p628_p4, %p622_p1 }
  0x2a   :  { %632 = shalt.err (!%p629_p5)
}
  0x2b   :  { %67 = dma.hbm_to_vmem [thread:$0]  %s779_s5, 1024, %s62_s16, [#allocation9], %s663_s29, %s663_s29, %s664_s30  }
  0x2c   :  { %653 = dma.done.wait [#allocation3], 128  }
  0x2d   :  { %654 = vsyncadd [#allocation3], 4294967168 }
  0x2e   :  { %655 = dma.done.wait [#allocation6], 1280  }
  0x2f   :  { %656 = vsyncadd [#allocation6], 4294966016 }
  0x30   :  { %657 = dma.done.wait [#allocation9], 1024  }
  0x31   :  { %658 = vsyncadd [#allocation9], 4294966272  ;;  %v667_v0 = vmov 0.0   ;;  %vm668_vm0 = vmmov 0   ;;  %v530_v1 = vld [vmem:[#allocation5 + $0x8] sm:$0xff]   ;;  %v531_v2 = vld [vmem:[#allocation5] sm:$0xff]   ;;  %v156_v17 = vlaneseq }
  0x32   :  { %472 = vmatprep.subr.bf16.mxu0 %v667_v0  ;;  %476 = vmatprep.mubr.msk.bf16.mxu0 %vm668_vm0, %v667_v0  ;;  %v533_v3 = vld [vmem:[#allocation7 + $0x38] sm:$0xff]   ;;  %v532_v4 = vld [vmem:[#allocation2] sm:$0xff]   ;;  %v534_v5 = vld [vmem:[#allocation7 + $0x30] sm:$0xff]   ;;  %vm106_vm1 = vcmask 261120   ;;  %v669_v29 = vmov 0  }
  0x33   :  { %480 = vmatprep.subr.bf16.mxu1 %v667_v0  ;;  %496 = vmatprep.mubr.msk.bf16.mxu1 %vm668_vm0, %v667_v0  ;;  %v535_v6 = vld [vmem:[#allocation7 + $0x28] sm:$0xff]   ;;  %v536_v7 = vld [vmem:[#allocation7 + $0x20] sm:$0xff]   ;;  %v537_v8 = vld [vmem:[#allocation7 + $0x18] sm:$0xff]   ;;  %v157_v18 = vshrl.u32 %v156_v17, 7 }
  0x34   :  { %473 = vmatpush3.bf16.msra.mxu0 %v530_v1  ;;  %481 = vmatpush3.bf16.msra.mxu1 %v533_v3  ;;  %v538_v9 = vld [vmem:[#allocation7 + $0x10] sm:$0xff]   ;;  %v539_v10 = vld [vmem:[#allocation7 + $0x8] sm:$0xff]   ;;  %v540_v11 = vld [vmem:[#allocation7] sm:$0xff]  }
  0x35   :  { %474 = vmatprep.subr.bf16.mxu0 %v667_v0  ;;  %482 = vmatprep.subr.bf16.mxu1 %v667_v0  ;;  %v541_v12 = vld [vmem:[#allocation8 + $0x38] sm:$0xff]   ;;  %v542_v13 = vld [vmem:[#allocation8 + $0x30] sm:$0xff]   ;;  %v543_v14 = vld [vmem:[#allocation8 + $0x28] sm:$0xff]   ;;  %v158_v21 = vsub.s32 0, %v157_v18 }
  0x36   :  { %v544_v15 = vld [vmem:[#allocation8 + $0x20] sm:$0xff]   ;;  %v545_v16 = vld [vmem:[#allocation8 + $0x18] sm:$0xff]   ;;  %v152_v19 = vld [vmem:[%s776_s2] sm:$0x1] }
  0x37   :  { %v154_v20 = vpack.i.b16 %v152_v19, %v152_v19  ;;  %v546_v31 = vld [vmem:[#allocation8 + $0x10] sm:$0xff]   ;;  %v547_v32 = vld [vmem:[#allocation8 + $0x8] sm:$0xff]   ;;  %v548_v33 = vld [vmem:[#allocation8] sm:$0xff]  }
  0x38   :  { %475 = vmatpush3.bf16.msra.mxu0 %v531_v2  ;;  %483 = vmatpush3.bf16.msra.mxu1 %v534_v5  ;;  %v268_v34 = vld [vmem:[%s778_s4] sm:$0x1]  ;;  %s670_s4 = smov [#allocation10]  }
  0x39   :  { %500 = vmatprep.subr.bf16.mxu0 %v667_v0  ;;  %484 = vmatprep.subr.bf16.mxu1 %v667_v0  ;;  %v159_v24 = vrot.slane %v154_v20, %v158_v21  ;;  %v270_v35 = vpack.i.b16 %v268_v34, %v268_v34  ;;  %v433_v44 = vld [vmem:[%s780_s6] ss:$0 sm:$0xff]  ;;  %s407_s24 = sshll.u32 %s670_s4, 4  ;;  %s408_s24 = int_to_ptr.vmem [resolvable:$true] %s407_s24 }
  0x3a   :  { %s633_s25 = scalar_lea.vmem %s408_s24, 128  ;;  %p638_p7 = scmp.lt.s32.totalorder %s408_s24, %s408_s24 }
  0x3b   :  { %477 = vmatmul.mubr.msk.bf16.vlgmr.msra.gmra.mxu0 %vm106_vm1, %v532_v4  ;;  %v275_v38 = vrot.slane %v270_v35, %v158_v21  ;;  %p634_p6 = scmp.ne.s32.totalorder %s408_s24, %s633_s25  ;;  %p639_p8 = scmp.lt.s32.totalorder %s633_s25, %s633_s25 }
  0x3c   :  { %516 = vmatprep.mubr.msk.bf16.mxu0 %vm668_vm0, %v667_v0  ;;  %485 = vmatpush3.bf16.msra.mxu1 %v535_v6 }
  0x3d   :  { %486 = vmatprep.subr.bf16.mxu1 %v667_v0  ;;  %501 = vmatpush3.bf16.msra.mxu0 %v541_v12  ;;  %p640_p9 = por %p639_p8, %p638_p7 }
  0x3e   :  { %502 = vmatprep.subr.bf16.mxu0 %v667_v0 }
  0x3f   :  { %p641_p10 = pnand %p640_p9, %p634_p6 }
  0x40   :  { %487 = vmatpush3.bf16.msra.mxu1 %v536_v7 }
  0x41   :  { %488 = vmatprep.subr.bf16.mxu1 %v667_v0  ;;  %503 = vmatpush3.bf16.msra.mxu0 %v542_v13 }
  0x42   :  { %504 = vmatprep.subr.bf16.mxu0 %v667_v0 }
  0x44   :  { %489 = vmatpush3.bf16.msra.mxu1 %v537_v8 }
  0x45   :  { %490 = vmatprep.subr.bf16.mxu1 %v667_v0  ;;  %505 = vmatpush3.bf16.msra.mxu0 %v543_v14 }
  0x46   :  { %506 = vmatprep.subr.bf16.mxu0 %v667_v0 }
  0x48   :  { %491 = vmatpush3.bf16.msra.mxu1 %v538_v9 }
  0x49   :  { %492 = vmatprep.subr.bf16.mxu1 %v667_v0  ;;  %507 = vmatpush3.bf16.msra.mxu0 %v544_v15 }
  0x4a   :  { %508 = vmatprep.subr.bf16.mxu0 %v667_v0 }
  0x4c   :  { %493 = vmatpush3.bf16.msra.mxu1 %v539_v10 }
  0x4d   :  { %494 = vmatprep.subr.bf16.mxu1 %v667_v0  ;;  %509 = vmatpush3.bf16.msra.mxu0 %v545_v16 }
  0x4e   :  { %510 = vmatprep.subr.bf16.mxu0 %v667_v0 }
  0x50   :  { %495 = vmatpush3.bf16.msra.mxu1 %v540_v11 }
  0x51   :  { %511 = vmatpush3.bf16.msra.mxu0 %v546_v31 }
  0x52   :  { %512 = vmatprep.subr.bf16.mxu0 %v667_v0 }
  0x55   :  { %513 = vmatpush3.bf16.msra.mxu0 %v547_v32 }
  0x56   :  { %514 = vmatprep.subr.bf16.mxu0 %v667_v0 }
  0x59   :  { %515 = vmatpush3.bf16.msra.mxu0 %v548_v33 }
  0xfb   :  { %v144_v22 = vpop.f32.mrf.mxu0 }
  0xfd   :  { %v478_v23 = vpop.f32.mrf.mxu0 }
  0xff   :  { %v147_v25 = vpop.f32.mrf.mxu0 }
 0x100   :  { %v151_v26 = vpack.c.bf16 %v147_v25, %v144_v22 }
 0x101   :  { %v479_v27 = vpop.f32.mrf.mxu0 }
 0x102   :  { %v160_v28 = vadd.bf16 %v159_v24, %v151_v26 }
 0x104   :  { %v161_v30 = vmax.bf16 %v669_v29, %v160_v28 }
 0x106   :  { %497 = vmatmul.mubr.bf16.vlgmr.msra.gmra.mxu1 %v161_v30 }
 0x1c6   :  { %v260_v36 = vpop.f32.mrf.mxu1 }
 0x1c8   :  { %v498_v37 = vpop.f32.mrf.mxu1 }
 0x1ca   :  { %v263_v39 = vpop.f32.mrf.mxu1 }
 0x1cb   :  { %v267_v40 = vpack.c.bf16 %v263_v39, %v260_v36 }
 0x1cc   :  { %v499_v41 = vpop.f32.mrf.mxu1 }
 0x1cd   :  { %v276_v42 = vadd.bf16 %v275_v38, %v267_v40 }
 0x1cf   :  { %v277_v43 = vmax.bf16 %v669_v29, %v276_v42 }
 0x1d1   :  { %517 = vmatmul.mubr.bf16.vlgmr.msra.gmra.mxu0 %v277_v43 }
 0x291   :  { %v383_v45 = vpop.f32.mrf.mxu0 }
 0x292   :  { %v384_v46 = vadd.f32 %v433_v44, %v383_v45 }
 0x293   :  { %v518_v47 = vpop.f32.mrf.mxu0 }
 0x294   :  { %549 = vtanh.f32 %v384_v46 }
 0x295   :  { %v386_v48 = vpop.f32.mrf.mxu0 }
 0x296   :  { %v387_v49 = vadd.f32 %v433_v44, %v386_v48 }
 0x297   :  { %v519_v50 = vpop.f32.mrf.mxu0 }
 0x298   :  { %551 = vtanh.f32 %v387_v49 }
 0x2a1   :  { %v550_v51 = vpop.eup %549 }
 0x2a5   :  { %v552_v52 = vpop.eup %551 }
 0x2a6   :  { %v449_v53 = vpack.c.bf16 %v552_v52, %v550_v51 }
 0x2a8   :  { %450 = vst [vmem:[#allocation10] sm:$0xff] %v449_v53  }
 0x2a9   :  { %644 = shalt.err (!%p641_p10)
}
 0x2aa   :  { %413 = dma.vmem_to_hbm [thread:$0]  %s408_s24, 128, %s781_s7, [#allocation4], %s663_s29, %s663_s29, %s664_s30  }
 0x2ab   :  { %659 = dma.done.wait [#allocation4], 128  }
 0x2ac   :  { %660 = vsyncadd [#allocation4], 4294967168 }
 0x2ad   :  { %417 = vsyncpa [#allocation3], 1 }
 0x2ae   :  { %418 = vsyncpa [#allocation6], 1 }
 0x2af   :  { %419 = vsyncpa [#allocation9], 1 }
 0x2b0   :  { %420 = vsyncpa [#allocation4], 1 }

</bundles_post_ra>
